<compile_context>
chip_gen: v7x
topology: tpu7x:2x2x1
jax: 0.10.0
libtpu: 0.0.40
codegen_flags: <defaults>
</compile_context>

<pallas_src>
from functools import partial

import jax
import jax.numpy as jnp
from jax.experimental import pallas as pl
from jax.experimental.pallas import tpu as pltpu

_LANE = 128
_SUBLANE = 8


def _classifier_kernel(w1_ref, b1_ref, w2_ref, b2_ref, x_ref, o_ref):
    # w1_ref: SMEM (6,) f32 = fc1 weight, (in=2, out=3) flattened row-major
    # b1_ref: SMEM (3,) f32
    # w2_ref: SMEM (6,) f32 = fc2 weight, (in=3, out=2) flattened row-major
    # b2_ref: SMEM (2,) f32
    # x_ref : VMEM (2, S, 128) feature-major input block (batch on sublanes+lanes)
    # o_ref : VMEM (2, S, 128) feature-major log-prob block
    x0 = x_ref[0].astype(jnp.float32)          # (S, 128) dense plane
    x1 = x_ref[1].astype(jnp.float32)          # (S, 128) dense plane

    # fc1 + tanh: h_j = tanh(w1[0,j]*x0 + w1[1,j]*x1 + b1[j])   (VPU + EUP)
    h0 = jnp.tanh(w1_ref[0] * x0 + w1_ref[3] * x1 + b1_ref[0])
    h1 = jnp.tanh(w1_ref[1] * x0 + w1_ref[4] * x1 + b1_ref[1])
    h2 = jnp.tanh(w1_ref[2] * x0 + w1_ref[5] * x1 + b1_ref[2])

    # fc2: l_k = sum_i h_i * w2[i,k] + b2[k]
    l0 = h0 * w2_ref[0] + h1 * w2_ref[2] + h2 * w2_ref[4] + b2_ref[0]
    l1 = h0 * w2_ref[1] + h1 * w2_ref[3] + h2 * w2_ref[5] + b2_ref[1]

    # 2-class log_softmax, elementwise (no XLU reduce):
    # lse = max(l0,l1) + log(1 + exp(-|l1-l0|))  -> 1 exp + 1 log on the EUP.
    m = jnp.maximum(l0, l1)
    lse = m + jnp.log(1.0 + jnp.exp(-jnp.abs(l1 - l0)))

    # Dense full-plane stores (unmasked vst).
    o_ref[0] = (l0 - lse).astype(o_ref.dtype)
    o_ref[1] = (l1 - lse).astype(o_ref.dtype)


def _choose_tiling(batch, max_block_rows):
    """Pick (block_rows S, n_blocks, padded_rows). All values are Python ints."""
    rows = pl.cdiv(batch, _LANE)                     # rows of 128 samples needed
    rows = pl.cdiv(rows, _SUBLANE) * _SUBLANE        # sublane-align (multiple of 8)
    s = min(max_block_rows, rows)
    # Give megacore (v7x: 2 TCs) at least 2 blocks when there is enough data.
    if rows >= 2 * _SUBLANE and rows // s < 2:
        s = max(_SUBLANE, (rows // 2) // _SUBLANE * _SUBLANE)
    n_blocks = pl.cdiv(rows, s)
    rows_pad = n_blocks * s
    return s, n_blocks, rows_pad


@partial(jax.jit, static_argnames=("max_block_rows",))
def classifier_2_classes_pallas(x, w1, b1, w2, b2, *, max_block_rows=2048):
    """x: (B, 2) -> (B, 2) log-probabilities via a Pallas TPU kernel.

    NOTE weight layout: w1 is (in=2, out=3) and w2 is (in=3, out=2), i.e. the
    TRANSPOSE of PyTorch nn.Linear's (out, in) `.weight` tensors.
    """
    assert x.ndim == 2 and x.shape[1] == 2, x.shape
    assert w1.shape == (2, 3) and b1.shape == (3,), (w1.shape, b1.shape)
    assert w2.shape == (3, 2) and b2.shape == (2,), (w2.shape, b2.shape)

    batch = x.shape[0]
    io_dtype = jnp.bfloat16 if x.dtype == jnp.bfloat16 else jnp.float32
    itemsize = 2 if io_dtype == jnp.bfloat16 else 4

    s, n_blocks, rows_pad = _choose_tiling(batch, max_block_rows)
    b_pad = rows_pad * _LANE

    # Feature-major, sublane+lane dense: (2, rows_pad, 128).
    xt = jnp.pad(x.astype(io_dtype).T, ((0, 0), (0, b_pad - batch)))
    xt = xt.reshape(2, rows_pad, _LANE)

    out = pl.pallas_call(
        _classifier_kernel,
        out_shape=jax.ShapeDtypeStruct((2, rows_pad, _LANE), io_dtype),
        grid=(n_blocks,),
        in_specs=[
            pl.BlockSpec(memory_space=pltpu.MemorySpace.SMEM),   # w1 flat (6,)
            pl.BlockSpec(memory_space=pltpu.MemorySpace.SMEM),   # b1 (3,)
            pl.BlockSpec(memory_space=pltpu.MemorySpace.SMEM),   # w2 flat (6,)
            pl.BlockSpec(memory_space=pltpu.MemorySpace.SMEM),   # b2 (2,)
            pl.BlockSpec((2, s, _LANE), lambda i: (0, i, 0)),    # x block
        ],
        out_specs=pl.BlockSpec((2, s, _LANE), lambda i: (0, i, 0)),
        compiler_params=pltpu.CompilerParams(
            dimension_semantics=("parallel",),          # megacore batch split
            vmem_limit_bytes=32 * 1024 * 1024),         # raises v5e's 16 MiB default
        cost_estimate=pl.CostEstimate(
            flops=30 * b_pad,
            transcendentals=5 * b_pad,
            bytes_accessed=4 * b_pad * itemsize + 68),  # dense in+out traffic
    )(
        w1.reshape(-1).astype(jnp.float32),
        b1.astype(jnp.float32),
        w2.reshape(-1).astype(jnp.float32),
        b2.astype(jnp.float32),
        xt,
    )
    # Back to (B, 2) row-major, dropping batch padding.
    return out.reshape(2, b_pad).T[:batch, :]


def _reference(x, w1, b1, w2, b2):
    h = jnp.tanh(x.astype(jnp.float32) @ w1 + b1)
    logits = h @ w2 + b2
    return jax.nn.log_softmax(logits, axis=-1)


def classifier_2_classes(x, w1, b1, w2, b2, *, pallas_min_batch=1 << 17):
    """Dispatcher: below ~10^5 samples the pallas_call fixed overhead and the
    wrapper relayout dominate a ~KB-scale problem, so use the fused XLA path."""
    if x.shape[0] < pallas_min_batch:
        return _reference(x, w1, b1, w2, b2)
    return classifier_2_classes_pallas(x, w1, b1, w2, b2)


def _init_params(key):
    """Deterministic PyTorch-style Linear init: U(-1/sqrt(fan_in), 1/sqrt(fan_in)).

    Weights are stored as (in, out) = transpose of PyTorch's (out, in) layout.
    """
    k1, k2, k3, k4 = jax.random.split(key, 4)
    lim1 = 1.0 / jnp.sqrt(2.0)  # fc1: in_features = 2
    lim2 = 1.0 / jnp.sqrt(3.0)  # fc2: in_features = 3
    w1 = jax.random.uniform(k1, (2, 3), jnp.float32, -lim1, lim1)
    b1 = jax.random.uniform(k2, (3,), jnp.float32, -lim1, lim1)
    w2 = jax.random.uniform(k3, (3, 2), jnp.float32, -lim2, lim2)
    b2 = jax.random.uniform(k4, (2,), jnp.float32, -lim2, lim2)
    return w1, b1, w2, b2


if __name__ == "__main__":
    key = jax.random.PRNGKey(0)
    kx, kp = jax.random.split(key)
    w1, b1, w2, b2 = _init_params(kp)

    # Small batch (B=8): pads to one dense (2, 8, 128) block, grid=(1,).
    B = 8
    x = jax.random.normal(kx, (B, 2), jnp.float32)
    out = jax.block_until_ready(classifier_2_classes_pallas(x, w1, b1, w2, b2))
    ref = _reference(x, w1, b1, w2, b2)
    assert out.shape == (B, 2)
    assert jnp.allclose(out, ref, atol=1e-5, rtol=1e-5), (out, ref)

    # Multi-block batch (B=1200): rows -> 16, split into 2 blocks of (2, 8, 128)
    # so the "parallel" batch grid (megacore path) and padding are exercised.
    B2 = 1200
    x2 = jax.random.normal(jax.random.PRNGKey(1), (B2, 2), jnp.float32)
    out2 = jax.block_until_ready(classifier_2_classes_pallas(x2, w1, b1, w2, b2))
    ref2 = _reference(x2, w1, b1, w2, b2)
    assert out2.shape == (B2, 2)
    assert jnp.allclose(out2, ref2, atol=1e-5, rtol=1e-5), (out2, ref2)

    print("KERNEL_OK")
</pallas_src>

<mosaic_0001>
module attributes {stable_mosaic.version = 11 : i64} {
  func.func @_classifier_kernel(%arg0: i32, %arg1: memref<6xf32, #tpu.memory_space<smem>>, %arg2: memref<3xf32, #tpu.memory_space<smem>>, %arg3: memref<6xf32, #tpu.memory_space<smem>>, %arg4: memref<2xf32, #tpu.memory_space<smem>>, %arg5: memref<2x8x128xf32, #tpu.memory_space<vmem>>, %arg6: memref<2x8x128xf32, #tpu.memory_space<vmem>>) attributes {dimension_semantics = [#tpu.dimension_semantics<parallel>], iteration_bounds = array<i64: 1>, scalar_prefetch = 0 : i64, scratch_operands = 0 : i64, tpu.core_type = #tpu.core_type<tc>, window_params = [{transform_indices = @transform_0, window_bounds = array<i64: 6>}, {transform_indices = @transform_1, window_bounds = array<i64: 3>}, {transform_indices = @transform_2, window_bounds = array<i64: 6>}, {transform_indices = @transform_3, window_bounds = array<i64: 2>}, {transform_indices = @transform_4, window_bounds = array<i64: 2, 8, 128>}, {transform_indices = @transform_5, window_bounds = array<i64: 2, 8, 128>}]} {
    %c0 = arith.constant 0 : index
    %c0_0 = arith.constant 0 : index
    %c0_1 = arith.constant 0 : index
    %0 = vector.load %arg5[%c0, %c0_0, %c0_1] : memref<2x8x128xf32, #tpu.memory_space<vmem>>, vector<1x8x128xf32>
    %1 = vector.shape_cast %0 : vector<1x8x128xf32> to vector<8x128xf32>
    %c1 = arith.constant 1 : index
    %c0_2 = arith.constant 0 : index
    %c0_3 = arith.constant 0 : index
    %2 = vector.load %arg5[%c1, %c0_2, %c0_3] : memref<2x8x128xf32, #tpu.memory_space<vmem>>, vector<1x8x128xf32>
    %3 = vector.shape_cast %2 : vector<1x8x128xf32> to vector<8x128xf32>
    %c0_4 = arith.constant 0 : index
    %4 = memref.load %arg1[%c0_4] : memref<6xf32, #tpu.memory_space<smem>>
    %5 = vector.broadcast %4 : f32 to vector<8x128xf32>
    %6 = arith.mulf %5, %1 : vector<8x128xf32>
    %c3 = arith.constant 3 : index
    %7 = memref.load %arg1[%c3] : memref<6xf32, #tpu.memory_space<smem>>
    %8 = vector.broadcast %7 : f32 to vector<8x128xf32>
    %9 = arith.mulf %8, %3 : vector<8x128xf32>
    %10 = arith.addf %6, %9 : vector<8x128xf32>
    %c0_5 = arith.constant 0 : index
    %11 = memref.load %arg2[%c0_5] : memref<3xf32, #tpu.memory_space<smem>>
    %12 = vector.broadcast %11 : f32 to vector<8x128xf32>
    %13 = arith.addf %10, %12 : vector<8x128xf32>
    %14 = math.tanh %13 : vector<8x128xf32>
    %c1_6 = arith.constant 1 : index
    %15 = memref.load %arg1[%c1_6] : memref<6xf32, #tpu.memory_space<smem>>
    %16 = vector.broadcast %15 : f32 to vector<8x128xf32>
    %17 = arith.mulf %16, %1 : vector<8x128xf32>
    %c4 = arith.constant 4 : index
    %18 = memref.load %arg1[%c4] : memref<6xf32, #tpu.memory_space<smem>>
    %19 = vector.broadcast %18 : f32 to vector<8x128xf32>
    %20 = arith.mulf %19, %3 : vector<8x128xf32>
    %21 = arith.addf %17, %20 : vector<8x128xf32>
    %c1_7 = arith.constant 1 : index
    %22 = memref.load %arg2[%c1_7] : memref<3xf32, #tpu.memory_space<smem>>
    %23 = vector.broadcast %22 : f32 to vector<8x128xf32>
    %24 = arith.addf %21, %23 : vector<8x128xf32>
    %25 = math.tanh %24 : vector<8x128xf32>
    %c2 = arith.constant 2 : index
    %26 = memref.load %arg1[%c2] : memref<6xf32, #tpu.memory_space<smem>>
    %27 = vector.broadcast %26 : f32 to vector<8x128xf32>
    %28 = arith.mulf %27, %1 : vector<8x128xf32>
    %c5 = arith.constant 5 : index
    %29 = memref.load %arg1[%c5] : memref<6xf32, #tpu.memory_space<smem>>
    %30 = vector.broadcast %29 : f32 to vector<8x128xf32>
    %31 = arith.mulf %30, %3 : vector<8x128xf32>
    %32 = arith.addf %28, %31 : vector<8x128xf32>
    %c2_8 = arith.constant 2 : index
    %33 = memref.load %arg2[%c2_8] : memref<3xf32, #tpu.memory_space<smem>>
    %34 = vector.broadcast %33 : f32 to vector<8x128xf32>
    %35 = arith.addf %32, %34 : vector<8x128xf32>
    %36 = math.tanh %35 : vector<8x128xf32>
    %c0_9 = arith.constant 0 : index
    %37 = memref.load %arg3[%c0_9] : memref<6xf32, #tpu.memory_space<smem>>
    %38 = vector.broadcast %37 : f32 to vector<8x128xf32>
    %39 = arith.mulf %14, %38 : vector<8x128xf32>
    %c2_10 = arith.constant 2 : index
    %40 = memref.load %arg3[%c2_10] : memref<6xf32, #tpu.memory_space<smem>>
    %41 = vector.broadcast %40 : f32 to vector<8x128xf32>
    %42 = arith.mulf %25, %41 : vector<8x128xf32>
    %43 = arith.addf %39, %42 : vector<8x128xf32>
    %c4_11 = arith.constant 4 : index
    %44 = memref.load %arg3[%c4_11] : memref<6xf32, #tpu.memory_space<smem>>
    %45 = vector.broadcast %44 : f32 to vector<8x128xf32>
    %46 = arith.mulf %36, %45 : vector<8x128xf32>
    %47 = arith.addf %43, %46 : vector<8x128xf32>
    %c0_12 = arith.constant 0 : index
    %48 = memref.load %arg4[%c0_12] : memref<2xf32, #tpu.memory_space<smem>>
    %49 = vector.broadcast %48 : f32 to vector<8x128xf32>
    %50 = arith.addf %47, %49 : vector<8x128xf32>
    %c1_13 = arith.constant 1 : index
    %51 = memref.load %arg3[%c1_13] : memref<6xf32, #tpu.memory_space<smem>>
    %52 = vector.broadcast %51 : f32 to vector<8x128xf32>
    %53 = arith.mulf %14, %52 : vector<8x128xf32>
    %c3_14 = arith.constant 3 : index
    %54 = memref.load %arg3[%c3_14] : memref<6xf32, #tpu.memory_space<smem>>
    %55 = vector.broadcast %54 : f32 to vector<8x128xf32>
    %56 = arith.mulf %25, %55 : vector<8x128xf32>
    %57 = arith.addf %53, %56 : vector<8x128xf32>
    %c5_15 = arith.constant 5 : index
    %58 = memref.load %arg3[%c5_15] : memref<6xf32, #tpu.memory_space<smem>>
    %59 = vector.broadcast %58 : f32 to vector<8x128xf32>
    %60 = arith.mulf %36, %59 : vector<8x128xf32>
    %61 = arith.addf %57, %60 : vector<8x128xf32>
    %c1_16 = arith.constant 1 : index
    %62 = memref.load %arg4[%c1_16] : memref<2xf32, #tpu.memory_space<smem>>
    %63 = vector.broadcast %62 : f32 to vector<8x128xf32>
    %64 = arith.addf %61, %63 : vector<8x128xf32>
    %65 = arith.maximumf %50, %64 : vector<8x128xf32>
    %66 = arith.subf %64, %50 : vector<8x128xf32>
    %67 = math.absf %66 : vector<8x128xf32>
    %cst = arith.constant 0.000000e+00 : f32
    %68 = vector.broadcast %cst : f32 to vector<8x128xf32>
    %69 = arith.subf %68, %67 : vector<8x128xf32>
    %70 = math.exp %69 : vector<8x128xf32>
    %cst_17 = arith.constant 1.000000e+00 : f32
    %71 = vector.broadcast %cst_17 : f32 to vector<8x128xf32>
    %72 = arith.addf %71, %70 : vector<8x128xf32>
    %73 = math.log %72 : vector<8x128xf32>
    %74 = arith.addf %65, %73 : vector<8x128xf32>
    %75 = arith.subf %50, %74 : vector<8x128xf32>
    %c0_18 = arith.constant 0 : index
    %c0_19 = arith.constant 0 : index
    %c0_20 = arith.constant 0 : index
    %76 = vector.load %arg6[%c0_18, %c0_19, %c0_20] : memref<2x8x128xf32, #tpu.memory_space<vmem>>, vector<1x8x128xf32>
    %77 = vector.shape_cast %76 : vector<1x8x128xf32> to vector<8x128xf32>
    %78 = vector.shape_cast %75 : vector<8x128xf32> to vector<1x8x128xf32>
    tpu.vector_store %arg6[%c0_18, %c0_19, %c0_20], %78 {strides = array<i32>} : memref<2x8x128xf32, #tpu.memory_space<vmem>>, vector<1x8x128xf32>,
    %79 = arith.subf %64, %74 : vector<8x128xf32>
    %c1_21 = arith.constant 1 : index
    %c0_22 = arith.constant 0 : index
    %c0_23 = arith.constant 0 : index
    %80 = vector.load %arg6[%c1_21, %c0_22, %c0_23] : memref<2x8x128xf32, #tpu.memory_space<vmem>>, vector<1x8x128xf32>
    %81 = vector.shape_cast %80 : vector<1x8x128xf32> to vector<8x128xf32>
    %82 = vector.shape_cast %79 : vector<8x128xf32> to vector<1x8x128xf32>
    tpu.vector_store %arg6[%c1_21, %c0_22, %c0_23], %82 {strides = array<i32>} : memref<2x8x128xf32, #tpu.memory_space<vmem>>, vector<1x8x128xf32>,
    return
  }
  func.func @transform_0(%arg0: i32) -> i32 {
    %c0_i32 = arith.constant 0 : i32
    %c0_i32_0 = arith.constant 0 : i32
    return %c0_i32 : i32
  }
  func.func @transform_1(%arg0: i32) -> i32 {
    %c0_i32 = arith.constant 0 : i32
    %c0_i32_0 = arith.constant 0 : i32
    return %c0_i32 : i32
  }
  func.func @transform_2(%arg0: i32) -> i32 {
    %c0_i32 = arith.constant 0 : i32
    %c0_i32_0 = arith.constant 0 : i32
    return %c0_i32 : i32
  }
  func.func @transform_3(%arg0: i32) -> i32 {
    %c0_i32 = arith.constant 0 : i32
    %c0_i32_0 = arith.constant 0 : i32
    return %c0_i32 : i32
  }
  func.func @transform_4(%arg0: i32) -> (i32, i32, i32) {
    %c0_i32 = arith.constant 0 : i32
    %c0_i32_0 = arith.constant 0 : i32
    %c0_i32_1 = arith.constant 0 : i32
    return %c0_i32, %arg0, %c0_i32_0 : i32, i32, i32
  }
  func.func @transform_5(%arg0: i32) -> (i32, i32, i32) {
    %c0_i32 = arith.constant 0 : i32
    %c0_i32_0 = arith.constant 0 : i32
    %c0_i32_1 = arith.constant 0 : i32
    return %c0_i32, %arg0, %c0_i32_0 : i32, i32, i32
  }
}

</mosaic_0001>

<bundles_post_ra>
// kernel: classifier_2_classes_pallas.1
= control target key start
LH: loop header
LB: loop body
LE: loop exit
PB: predicated region body
PF: predicated region fallthrough
CT: control target
= control target key end

     0   :  { %10 = vsyncpa [#allocation3], 0  ;;  %s295_s0 = inlined_call_operand.vmem [shape: f32[6], index: 0, kind: input, shape index: {}]   ;;  %s296_s1 = inlined_call_operand.vmem [shape: f32[3], index: 1, kind: input, shape index: {}]   ;;  %s297_s2 = inlined_call_operand.vmem [shape: f32[6], index: 2, kind: input, shape index: {}]   ;;  %s298_s3 = inlined_call_operand.vmem [shape: f32[2], index: 3, kind: input, shape index: {}]   ;;  %s299_s4 = inlined_call_operand.vmem [shape: f32[2,8,128], index: 4, kind: input, shape index: {}]   ;;  %s300_s5 = inlined_call_operand.vmem [shape: f32[2,8,128], index: 5, kind: output, shape index: {}]  }
   0x1   :  { %11 = vsyncpa [#allocation5], 0  ;;  %s29_s20 = sshll.u32 %s296_s1, 4  ;;  %s30_s20 = int_to_ptr.vmem [resolvable:$true] %s29_s20 }
   0x2   :  { %12 = vsyncpa [#allocation8], 0  ;;  %s19_s23 = sshll.u32 %s295_s0, 4  ;;  %s183_s24 = scalar_lea.vmem %s30_s20, 16  ;;  %s20_s23 = int_to_ptr.vmem [resolvable:$true] %s19_s23 }
   0x3   :  { %p184_p0 = scmp.ne.s32.totalorder %s30_s20, %s183_s24  ;;  %p188_p1 = scmp.lt.s32.totalorder %s30_s20, %s30_s20 }
   0x4   :  { %p189_p2 = scmp.lt.s32.totalorder %s183_s24, %s183_s24 }
   0x6   :  { %p190_p3 = por %p189_p2, %p188_p1 }
   0x8   :  { %p191_p4 = pnand %p190_p3, %p184_p0 }
   0xa   :  { %194 = shalt.err (!%p191_p4)
}
   0xb   :  { %s237_s25 = smov [#allocation4]   ;;  %s195_s26 = scalar_lea.vmem %s20_s23, 16 }
   0xc   :  { %32 = dma.vmem_to_smem %s30_s20, 16, %s237_s25, [#allocation5]  }
   0xd   :  { %p196_p5 = scmp.ne.s32.totalorder %s20_s23, %s195_s26  ;;  %p200_p6 = scmp.lt.s32.totalorder %s20_s23, %s20_s23 }
   0xe   :  { %p201_p7 = scmp.lt.s32.totalorder %s195_s26, %s195_s26 }
  0x10   :  { %p202_p8 = por %p201_p7, %p200_p6 }
  0x12   :  { %p203_p9 = pnand %p202_p8, %p196_p5 }
  0x14   :  { %206 = shalt.err (!%p203_p9)
}
  0x15   :  { %s238_s1 = smov [#allocation2]   ;;  %s39_s28 = sshll.u32 %s297_s2, 4  ;;  %s40_s28 = int_to_ptr.vmem [resolvable:$true] %s39_s28 }
  0x16   :  { %22 = dma.vmem_to_smem %s20_s23, 16, %s238_s1, [#allocation3]  }
  0x17   :  { %s49_s6 = sshll.u32 %s298_s3, 4  ;;  %s207_s7 = scalar_lea.vmem %s40_s28, 16  ;;  %s50_s6 = int_to_ptr.vmem [resolvable:$true] %s49_s6 }
  0x18   :  { %p208_p10 = scmp.ne.s32.totalorder %s40_s28, %s207_s7  ;;  %p212_p11 = scmp.lt.s32.totalorder %s40_s28, %s40_s28 }
  0x19   :  { %p213_p12 = scmp.lt.s32.totalorder %s207_s7, %s207_s7 }
  0x1b   :  { %p214_p13 = por %p213_p12, %p212_p11 }
  0x1d   :  { %p215_p0 = pnand %p214_p13, %p208_p10 }
  0x1f   :  { %218 = shalt.err (!%p215_p0)
}
  0x20   :  { %s239_s8 = smov [#allocation6]   ;;  %s219_s9 = scalar_lea.vmem %s50_s6, 16 }
  0x21   :  { %42 = dma.vmem_to_smem %s40_s28, 16, %s239_s8, [#allocation5]  }
  0x22   :  { %p220_p1 = scmp.ne.s32.totalorder %s50_s6, %s219_s9  ;;  %p224_p2 = scmp.lt.s32.totalorder %s50_s6, %s50_s6 }
  0x23   :  { %p225_p3 = scmp.lt.s32.totalorder %s219_s9, %s219_s9 }
  0x25   :  { %p226_p4 = por %p225_p3, %p224_p2 }
  0x27   :  { %p227_p5 = pnand %p226_p4, %p220_p1 }
  0x29   :  { %230 = shalt.err (!%p227_p5)
}
  0x2a   :  { %s240_s2 = smov [#allocation7]  }
  0x2b   :  { %52 = dma.vmem_to_smem %s50_s6, 16, %s240_s2, [#allocation8]  }
  0x2c   :  { %231 = dma.done.wait [#allocation3], 16  }
  0x2d   :  { %232 = vsyncadd [#allocation3], 4294967280 }
  0x2e   :  { %233 = dma.done.wait [#allocation5], 32  }
  0x2f   :  { %234 = vsyncadd [#allocation5], 4294967264 }
  0x30   :  { %235 = dma.done.wait [#allocation8], 16  }
  0x31   :  { %236 = vsyncadd [#allocation8], 4294967280 }
  0x32   :  { %67 = sfence }
  0x33   :  { %s71_s3 = sld [smem:[#allocation2]]  ;;  %s155_s10 = sld [smem:[#allocation2 + $0x3]]  ;;  %v68_v0 = vld [vmem:[%s299_s4] sm:$0xff]  ;;  %v154_v1 = vld [vmem:[%s299_s4 + $0x8] sm:$0xff] }
  0x34   :  { %s78_s11 = sld [smem:[#allocation4]]  ;;  %s156_s12 = sld [smem:[#allocation2 + $0x1]] }
  0x35   :  { %s157_s13 = sld [smem:[#allocation2 + $0x4]]  ;;  %s158_s14 = sld [smem:[#allocation4 + $0x1]] }
  0x36   :  { %s159_s15 = sld [smem:[#allocation2 + $0x2]]  ;;  %s160_s16 = sld [smem:[#allocation2 + $0x5]] }
  0x37   :  { %s161_s21 = sld [smem:[#allocation4 + $0x2]]  ;;  %s104_s4 = sld [smem:[#allocation6]] }
  0x38   :  { %s164_s22 = sld [smem:[#allocation6 + $0x1]]  ;;  %s162_s23 = sld [smem:[#allocation6 + $0x2]] }
  0x39   :  { %v72_v2 = vstv %s71_s3  ;;  %v75_v3 = vstv %s155_s10  ;;  %s165_s24 = sld [smem:[#allocation6 + $0x3]]  ;;  %s163_s25 = sld [smem:[#allocation6 + $0x4]] }
  0x3a   :  { %v73_v4 = vmul.f32 %v72_v2, %v68_v0  ;;  %v76_v5 = vmul.f32 %v154_v1, %v75_v3  ;;  %v83_v6 = vstv %s156_s12  ;;  %v79_v7 = vstv %s78_s11  ;;  %s166_s26 = sld [smem:[#allocation6 + $0x5]]  ;;  %s115_s1 = sld [smem:[#allocation7]] }
  0x3b   :  { %v84_v8 = vmul.f32 %v83_v6, %v68_v0  ;;  %v86_v9 = vstv %s157_s13  ;;  %v90_v14 = vstv %s158_s14  ;;  %s167_s0 = sld [smem:[#allocation7 + $0x1]] }
  0x3c   :  { %v77_v10 = vadd.f32 %v76_v5, %v73_v4  ;;  %v87_v11 = vmul.f32 %v154_v1, %v86_v9  ;;  %v94_v12 = vstv %s159_s15  ;;  %v97_v13 = vstv %s160_s16 }
  0x3d   :  { %v95_v15 = vmul.f32 %v94_v12, %v68_v0  ;;  %v98_v16 = vmul.f32 %v154_v1, %v97_v13  ;;  %v101_v19 = vstv %s161_s21  ;;  %v105_v23 = vstv %s104_s4 }
  0x3e   :  { %v80_v17 = vadd.f32 %v79_v7, %v77_v10  ;;  %v88_v18 = vadd.f32 %v87_v11, %v84_v8  ;;  %v119_v24 = vstv %s164_s22  ;;  %v108_v26 = vstv %s162_s23 }
  0x3f   :  { %v99_v20 = vadd.f32 %v98_v16, %v95_v15  ;;  %v122_v27 = vstv %s165_s24  ;;  %v112_v29 = vstv %s163_s25 }
  0x40   :  { %173 = vtanh.f32 %v80_v17  ;;  %v91_v21 = vadd.f32 %v90_v14, %v88_v18  ;;  %v126_v31 = vstv %s166_s26  ;;  %v116_v40 = vstv %s115_s1 }
  0x41   :  { %v102_v22 = vadd.f32 %v101_v19, %v99_v20  ;;  %v130_v41 = vstv %s167_s0 }
  0x42   :  { %175 = vtanh.f32 %v91_v21 }
  0x43   :  { %177 = vtanh.f32 %v102_v22 }
  0x4a   :  { %v174_v25 = vpop.eup %173 }
  0x4b   :  { %v106_v28 = vmul.f32 %v174_v25, %v105_v23  ;;  %v120_v30 = vmul.f32 %v174_v25, %v119_v24 }
  0x4c   :  { %v176_v32 = vpop.eup %175 }
  0x4d   :  { %v178_v33 = vpop.eup %177  ;;  %v109_v34 = vmul.f32 %v176_v32, %v108_v26  ;;  %v123_v35 = vmul.f32 %v176_v32, %v122_v27 }
  0x4e   :  { %v113_v36 = vmul.f32 %v178_v33, %v112_v29  ;;  %v127_v37 = vmul.f32 %v178_v33, %v126_v31 }
  0x4f   :  { %v110_v38 = vadd.f32 %v109_v34, %v106_v28  ;;  %v124_v39 = vadd.f32 %v123_v35, %v120_v30 }
  0x51   :  { %v114_v42 = vadd.f32 %v113_v36, %v110_v38  ;;  %v128_v43 = vadd.f32 %v127_v37, %v124_v39 }
  0x53   :  { %v117_v44 = vadd.f32 %v116_v40, %v114_v42  ;;  %v131_v45 = vadd.f32 %v130_v41, %v128_v43 }
  0x55   :  { %v133_v46 = vsub.f32 %v131_v45, %v117_v44  ;;  %v132_v52 = vmax.f32 %v117_v44, %v131_v45 }
  0x57   :  { %v134_v47 = vand.u32 2147483647, %v133_v46 }
  0x59   :  { %v135_v48 = vsub.f32 0.0, %v134_v47 }
  0x5b   :  { %v136_v49 = vmul.f32 1.442695, %v135_v48 }
  0x5d   :  { %179 = vpow2.f32 %v136_v49 }
  0x67   :  { %v180_v50 = vpop.eup %179 }
  0x68   :  { %v138_v51 = vadd.f32 1.0, %v180_v50 }
  0x6a   :  { %181 = vlog2.f32 %v138_v51 }
  0x74   :  { %v182_v53 = vpop.eup %181 }
  0x75   :  { %v140_v54 = vmul.f32 0.6931472, %v182_v53 }
  0x77   :  { %v141_v55 = vadd.f32 %v140_v54, %v132_v52 }
  0x79   :  { %v142_v56 = vsub.f32 %v117_v44, %v141_v55  ;;  %v144_v57 = vsub.f32 %v131_v45, %v141_v55 }
  0x7b   :  { %143 = vst [vmem:[%s300_s5] sm:$0xff] %v142_v56  ;;  %168 = vst [vmem:[%s300_s5 + $0x8] sm:$0xff] %v144_v57 }
  0x7c   :  { %151 = vsyncpa [#allocation3], 1 }
  0x7d   :  { %152 = vsyncpa [#allocation5], 1 }
  0x7e   :  { %153 = vsyncpa [#allocation8], 1 }

</bundles_post_ra>
